<compile_context>
chip_gen: v6e
topology: v6e:2x2x1
jax: 0.10.0
libtpu: 0.0.40
codegen_flags: <defaults>
</compile_context>

<pallas_src>
import jax
import jax.numpy as jnp
from jax.experimental import pallas as pl
from jax.experimental.pallas import tpu as pltpu


_MAX_BATCH_PER_STEP = 4  # amortizes grid-step overhead; VMEM temporaries stay ~1 MiB/step


def _batch_block(B):
    for bb in range(min(B, _MAX_BATCH_PER_STEP), 0, -1):
        if B % bb == 0:
            return bb
    return 1


# ----------------------------------------------------------------------------
# Fused RSAGEConv2d kernel (one grid step covers `bb` batch elements)
# ----------------------------------------------------------------------------
def _rsage_kernel(x_ref, idx_ref, wpre_ref, wnx_ref, wna_ref, b_ref, o_ref):
    BB, C, N = x_ref.shape
    KN = idx_ref.shape[2]
    K = KN // N
    Cout = wpre_ref.shape[0]

    # Loop-invariant values hoisted out of the per-batch loop (iota/broadcasts
    # are not CSE'd if re-emitted per iteration).
    row_ids = jax.lax.broadcasted_iota(jnp.int32, (N, KN), 0)            # (N, K*N)
    wpre = wpre_ref[...]                                                 # (Cout, C)
    wnx = wnx_ref[...]                                                   # (Cout, C)
    wna = wna_ref[...]                                                   # (Cout, Cout)
    bias = b_ref[...]                                                    # (Cout, N)

    def body(b, carry):
        x = x_ref[b]                                                     # (C, N)
        idx_row = idx_ref[b]                                             # (1, K*N)

        # One-hot neighbor-select matrix, single broadcast compare:
        #   sel[j, k*N + i] = 1.0  iff  idx[k, i] == j
        sel = (row_ids == idx_row).astype(jnp.float32)                   # (N, K*N)

        # Fused gather of x as ONE MXU matmul: gathered[:, k*N+i] = x[:, idx[k,i]]
        gathered = jnp.dot(x, sel, preferred_element_type=jnp.float32)   # (C, K*N)

        # pre_nn (1x1 conv, no bias) applied ONCE to the gathered slab.
        pre = jnp.dot(wpre, gathered, preferred_element_type=jnp.float32)  # (Cout, K*N)

        # K-max over static, lane-aligned column slices (no reshape/relayout);
        # pre_nn's ReLU moved after the max (ReLU is monotone).
        aggr = pre[:, 0:N]
        for k in range(1, K):
            aggr = jnp.maximum(aggr, pre[:, k * N:(k + 1) * N])
        aggr = jnp.maximum(aggr, 0.0)                                    # (Cout, N)

        # nn (1x1 conv over concat(x, aggr), no bias), split over the two halves:
        #   W_nn @ [x ; aggr] = W_nn[:, :C] @ x + W_nn[:, C:] @ aggr
        h = (jnp.dot(wnx, x, preferred_element_type=jnp.float32)
             + jnp.dot(wna, aggr, preferred_element_type=jnp.float32))   # (Cout, N)
        h = jnp.maximum(h, 0.0) + bias                                   # ReLU, then bias

        # F.normalize(out, dim=1): rsqrt (EUP) + mul instead of sqrt + divide (VPU).
        ss = jnp.sum(h * h, axis=0, keepdims=True)                       # (1, N)
        inv = jax.lax.rsqrt(jnp.maximum(ss, 1e-24))                      # == 1/max(||h||2, 1e-12)
        o_ref[b] = h * inv
        return carry

    jax.lax.fori_loop(0, BB, body, 0)


# ----------------------------------------------------------------------------
# Wrapper
# ----------------------------------------------------------------------------
@jax.jit
def rsage_conv2d_forward(x_nchw, edge_index, w_pre, w_nn, bias):
    """x: (B, C, N, 1), edge_index: (2, B, N, K) int, w_pre: (Cout, C),
    w_nn: (Cout, C + Cout), bias: (Cout,)  ->  (B, Cout, N, 1)."""
    B, C, N, _ = x_nchw.shape
    K = edge_index.shape[-1]
    Cout = w_pre.shape[0]
    bb = _batch_block(B)

    # TODO(synk): relative=True branch (pre_nn(x_j - x_i) with edge_index[1]) not
    # implemented; the module default relative=False is what is reproduced here.
    x2 = x_nchw[..., 0].astype(jnp.float32)                             # (B, C, N) native layout
    # Neighbor ids flattened to (B, 1, K*N), k-major, so the kernel's one-hot
    # compare needs no in-kernel reshape/relayout of the index tile.
    idx_flat = (jnp.swapaxes(edge_index[0], 1, 2)
                .astype(jnp.int32).reshape(B, 1, K * N))
    w_nn_x = w_nn[:, :C].astype(jnp.float32)                            # (Cout, C)
    w_nn_a = w_nn[:, C:].astype(jnp.float32)                            # (Cout, Cout)
    # bias pre-broadcast (grid-resident weight) -> plain VPU add in-kernel.
    b_bcast = jnp.broadcast_to(bias.astype(jnp.float32).reshape(Cout, 1), (Cout, N))

    # VMEM note: the one-hot sel temporary is 4*K*N^2 bytes (~0.5 MiB at N=128,
    # K=8). For large point clouds (N >= ~512, esp. v7x's 64 MiB VMEM) re-tile
    # over N or switch to an index-driven (scalar-prefetch / DMA) gather.
    out = pl.pallas_call(
        _rsage_kernel,
        out_shape=jax.ShapeDtypeStruct((B, Cout, N), jnp.float32),
        grid=(B // bb,),
        in_specs=[
            pl.BlockSpec((bb, C, N), lambda g: (g, 0, 0)),              # x (lane-dense: N on lanes)
            pl.BlockSpec((bb, 1, K * N), lambda g: (g, 0, 0)),          # flattened neighbor ids
            pl.BlockSpec((Cout, C), lambda g: (0, 0)),                  # W_pre (resident)
            pl.BlockSpec((Cout, C), lambda g: (0, 0)),                  # W_nn[:, :C]
            pl.BlockSpec((Cout, Cout), lambda g: (0, 0)),               # W_nn[:, C:]
            pl.BlockSpec((Cout, N), lambda g: (0, 0)),                  # bias (pre-broadcast)
        ],
        out_specs=pl.BlockSpec((bb, Cout, N), lambda g: (g, 0, 0)),     # lane-dense output
        compiler_params=pltpu.CompilerParams(
            dimension_semantics=("parallel",)),
    )(x2, idx_flat, w_pre.astype(jnp.float32), w_nn_x, w_nn_a, b_bcast)

    return out[..., None]                                               # (B, Cout, N, 1)


# ----------------------------------------------------------------------------
# Pure-JAX reference mirroring the PyTorch op order
# ----------------------------------------------------------------------------
def _reference(x_nchw, edge_index, w_pre, w_nn, bias):
    idx = edge_index[0]                                                 # (B, N, K)
    x2 = x_nchw[..., 0]                                                 # (B, C, N)
    x_j = jax.vmap(lambda xb, ib: xb[:, ib])(x2, idx)                   # (B, C, N, K)
    h = jnp.einsum("oc,bcnk->bonk", w_pre, x_j)
    h = jnp.maximum(h, 0.0)                                             # pre_nn ReLU
    aggr = jnp.max(h, axis=-1, keepdims=True)                           # (B, Cout, N, 1)
    cat = jnp.concatenate([x_nchw, aggr], axis=1)                       # (B, C+Cout, N, 1)
    out = jnp.einsum("oc,bcnk->bonk", w_nn, cat)
    out = jnp.maximum(out, 0.0) + bias.reshape(1, -1, 1, 1)
    norm = jnp.sqrt(jnp.sum(out * out, axis=1, keepdims=True))
    return out / jnp.maximum(norm, 1e-12)                               # F.normalize(dim=1)


if __name__ == "__main__":
    # small shapes consistent with the module: batch=2, in_channels=16,
    # out_channels=32, num_points=128, K=8 neighbors per point
    B, C, N, K = 2, 16, 128, 8
    Cout = 32

    key = jax.random.PRNGKey(0)
    kx, ke, kw1, kw2, kb = jax.random.split(key, 5)
    x = jax.random.normal(kx, (B, C, N, 1), dtype=jnp.float32)                     # NCHW
    nbr = jax.random.randint(ke, (B, N, K), 0, N, dtype=jnp.int32)                 # edge_index[0]
    ctr = jnp.broadcast_to(jnp.arange(N, dtype=jnp.int32)[None, :, None], (B, N, K))
    edge_index = jnp.stack([nbr, ctr], axis=0)                                     # (2, B, N, K)

    bound1 = 1.0 / (C ** 0.5)
    bound2 = 1.0 / ((C + Cout) ** 0.5)
    w_pre = jax.random.uniform(kw1, (Cout, C), minval=-bound1, maxval=bound1, dtype=jnp.float32)
    w_nn = jax.random.uniform(kw2, (Cout, C + Cout), minval=-bound2, maxval=bound2, dtype=jnp.float32)
    bias = jax.random.uniform(kb, (Cout,), minval=-0.1, maxval=0.1, dtype=jnp.float32)

    out = rsage_conv2d_forward(x, edge_index, w_pre, w_nn, bias)
    out = jax.block_until_ready(out)

    ref = _reference(x, edge_index, w_pre, w_nn, bias)
    assert out.shape == (B, Cout, N, 1), out.shape
    assert bool(jnp.all(jnp.isfinite(out)))
    assert jnp.allclose(out, ref, atol=1e-3, rtol=1e-3), float(jnp.max(jnp.abs(out - ref)))

    print("KERNEL_OK")
</pallas_src>

<mosaic_0001>
module attributes {stable_mosaic.version = 11 : i64} {
  func.func @_rsage_kernel(%arg0: i32, %arg1: memref<2x16x128xf32, #tpu.memory_space<vmem>>, %arg2: memref<2x1x1024xi32, #tpu.memory_space<vmem>>, %arg3: memref<32x16xf32, #tpu.memory_space<vmem>>, %arg4: memref<32x16xf32, #tpu.memory_space<vmem>>, %arg5: memref<32x32xf32, #tpu.memory_space<vmem>>, %arg6: memref<32x128xf32, #tpu.memory_space<vmem>>, %arg7: memref<2x32x128xf32, #tpu.memory_space<vmem>>) attributes {dimension_semantics = [#tpu.dimension_semantics<parallel>], iteration_bounds = array<i64: 1>, scalar_prefetch = 0 : i64, scratch_operands = 0 : i64, tpu.core_type = #tpu.core_type<tc>, window_params = [{transform_indices = @transform_0, window_bounds = array<i64: 2, 16, 128>}, {transform_indices = @transform_1, window_bounds = array<i64: 2, 1, 1024>}, {pipeline_mode = #tpu.pipeline_mode<synchronous>, transform_indices = @transform_2, window_bounds = array<i64: 32, 16>}, {pipeline_mode = #tpu.pipeline_mode<synchronous>, transform_indices = @transform_3, window_bounds = array<i64: 32, 16>}, {pipeline_mode = #tpu.pipeline_mode<synchronous>, transform_indices = @transform_4, window_bounds = array<i64: 32, 32>}, {pipeline_mode = #tpu.pipeline_mode<synchronous>, transform_indices = @transform_5, window_bounds = array<i64: 32, 128>}, {transform_indices = @transform_6, window_bounds = array<i64: 2, 32, 128>}]} {
    %0 = tpu.iota {dimensions = array<i32: 0>} : vector<128x1024xi32>
    %c0 = arith.constant 0 : index
    %c0_0 = arith.constant 0 : index
    %1 = vector.load %arg3[%c0, %c0_0] : memref<32x16xf32, #tpu.memory_space<vmem>>, vector<32x16xf32>
    %c0_1 = arith.constant 0 : index
    %c0_2 = arith.constant 0 : index
    %2 = vector.load %arg4[%c0_1, %c0_2] : memref<32x16xf32, #tpu.memory_space<vmem>>, vector<32x16xf32>
    %c0_3 = arith.constant 0 : index
    %c0_4 = arith.constant 0 : index
    %3 = vector.load %arg5[%c0_3, %c0_4] : memref<32x32xf32, #tpu.memory_space<vmem>>, vector<32x32xf32>
    %c0_5 = arith.constant 0 : index
    %c0_6 = arith.constant 0 : index
    %4 = vector.load %arg6[%c0_5, %c0_6] : memref<32x128xf32, #tpu.memory_space<vmem>>, vector<32x128xf32>
    %c0_i32 = arith.constant 0 : i32
    %c2_i32 = arith.constant 2 : i32
    %5 = arith.addi %c0_i32, %c2_i32 : i32
    %c1_i32 = arith.constant 1 : i32
    scf.for %arg8 = %c0_i32 to %5 step %c1_i32  : i32 {
      %6 = arith.index_cast %arg8 : i32 to index
      %c0_8 = arith.constant 0 : index
      %c0_9 = arith.constant 0 : index
      %7 = vector.load %arg1[%6, %c0_8, %c0_9] : memref<2x16x128xf32, #tpu.memory_space<vmem>>, vector<1x16x128xf32>
      %8 = vector.shape_cast %7 : vector<1x16x128xf32> to vector<16x128xf32>
      %9 = arith.index_cast %arg8 : i32 to index
      %c0_10 = arith.constant 0 : index
      %c0_11 = arith.constant 0 : index
      %10 = vector.load %arg2[%9, %c0_10, %c0_11] : memref<2x1x1024xi32, #tpu.memory_space<vmem>>, vector<1x1x1024xi32>
      %11 = vector.shape_cast %10 : vector<1x1x1024xi32> to vector<1x1024xi32>
      %12 = vector.broadcast %11 : vector<1x1024xi32> to vector<128x1024xi32>
      %13 = arith.cmpi eq, %0, %12 : vector<128x1024xi32>
      %14 = arith.extui %13 : vector<128x1024xi1> to vector<128x1024xi32>
      %15 = arith.sitofp %14 : vector<128x1024xi32> to vector<128x1024xf32>
      %cst = arith.constant dense<0.000000e+00> : vector<16x1024xf32>
      %16 = tpu.matmul %8, %15, %cst {dimension_numbers = #tpu.dot_dimension_numbers<[1], [0], [0], [1], [0, 0, 1, 1], [], []>} : vector<16x128xf32>, vector<128x1024xf32>, vector<16x1024xf32> -> vector<16x1024xf32>
      %cst_12 = arith.constant dense<0.000000e+00> : vector<32x1024xf32>
      %17 = tpu.matmul %1, %16, %cst_12 {dimension_numbers = #tpu.dot_dimension_numbers<[1], [0], [0], [1], [0, 0, 1, 1], [], []>} : vector<32x16xf32>, vector<16x1024xf32>, vector<32x1024xf32> -> vector<32x1024xf32>
      %18 = vector.extract_strided_slice %17 {offsets = [0, 0], sizes = [32, 128], strides = [1, 1]} : vector<32x1024xf32> to vector<32x128xf32>
      %19 = vector.extract_strided_slice %17 {offsets = [0, 128], sizes = [32, 128], strides = [1, 1]} : vector<32x1024xf32> to vector<32x128xf32>
      %20 = arith.maximumf %18, %19 : vector<32x128xf32>
      %21 = vector.extract_strided_slice %17 {offsets = [0, 256], sizes = [32, 128], strides = [1, 1]} : vector<32x1024xf32> to vector<32x128xf32>
      %22 = arith.maximumf %20, %21 : vector<32x128xf32>
      %23 = vector.extract_strided_slice %17 {offsets = [0, 384], sizes = [32, 128], strides = [1, 1]} : vector<32x1024xf32> to vector<32x128xf32>
      %24 = arith.maximumf %22, %23 : vector<32x128xf32>
      %25 = vector.extract_strided_slice %17 {offsets = [0, 512], sizes = [32, 128], strides = [1, 1]} : vector<32x1024xf32> to vector<32x128xf32>
      %26 = arith.maximumf %24, %25 : vector<32x128xf32>
      %27 = vector.extract_strided_slice %17 {offsets = [0, 640], sizes = [32, 128], strides = [1, 1]} : vector<32x1024xf32> to vector<32x128xf32>
      %28 = arith.maximumf %26, %27 : vector<32x128xf32>
      %29 = vector.extract_strided_slice %17 {offsets = [0, 768], sizes = [32, 128], strides = [1, 1]} : vector<32x1024xf32> to vector<32x128xf32>
      %30 = arith.maximumf %28, %29 : vector<32x128xf32>
      %31 = vector.extract_strided_slice %17 {offsets = [0, 896], sizes = [32, 128], strides = [1, 1]} : vector<32x1024xf32> to vector<32x128xf32>
      %32 = arith.maximumf %30, %31 : vector<32x128xf32>
      %cst_13 = arith.constant 0.000000e+00 : f32
      %33 = vector.broadcast %cst_13 : f32 to vector<32x128xf32>
      %34 = arith.maximumf %32, %33 : vector<32x128xf32>
      %cst_14 = arith.constant dense<0.000000e+00> : vector<32x128xf32>
      %35 = tpu.matmul %2, %8, %cst_14 {dimension_numbers = #tpu.dot_dimension_numbers<[1], [0], [0], [1], [0, 0, 1, 1], [], []>} : vector<32x16xf32>, vector<16x128xf32>, vector<32x128xf32> -> vector<32x128xf32>
      %cst_15 = arith.constant dense<0.000000e+00> : vector<32x128xf32>
      %36 = tpu.matmul %3, %34, %cst_15 {dimension_numbers = #tpu.dot_dimension_numbers<[1], [0], [0], [1], [0, 0, 1, 1], [], []>} : vector<32x32xf32>, vector<32x128xf32>, vector<32x128xf32> -> vector<32x128xf32>
      %37 = arith.addf %35, %36 : vector<32x128xf32>
      %cst_16 = arith.constant 0.000000e+00 : f32
      %38 = vector.broadcast %cst_16 : f32 to vector<32x128xf32>
      %39 = arith.maximumf %37, %38 : vector<32x128xf32>
      %40 = arith.addf %39, %4 : vector<32x128xf32>
      %41 = arith.mulf %40, %40 : vector<32x128xf32>
      %cst_17 = arith.constant dense<0.000000e+00> : vector<128xf32>
      %42 = vector.multi_reduction <add>, %41, %cst_17 [0] : vector<32x128xf32> to vector<128xf32>
      %43 = vector.shape_cast %42 : vector<128xf32> to vector<1x128xf32>
      %cst_18 = arith.constant 1.000000e-24 : f32
      %44 = vector.broadcast %cst_18 : f32 to vector<1x128xf32>
      %45 = arith.maximumf %43, %44 : vector<1x128xf32>
      %46 = math.rsqrt %45 : vector<1x128xf32>
      %47 = vector.broadcast %46 : vector<1x128xf32> to vector<32x128xf32>
      %48 = arith.mulf %40, %47 : vector<32x128xf32>
      %49 = arith.index_cast %arg8 : i32 to index
      %c0_19 = arith.constant 0 : index
      %c0_20 = arith.constant 0 : index
      %50 = vector.load %arg7[%49, %c0_19, %c0_20] : memref<2x32x128xf32, #tpu.memory_space<vmem>>, vector<1x32x128xf32>
      %51 = vector.shape_cast %50 : vector<1x32x128xf32> to vector<32x128xf32>
      %52 = vector.shape_cast %48 : vector<32x128xf32> to vector<1x32x128xf32>
      tpu.vector_store %arg7[%49, %c0_19, %c0_20], %52 {strides = array<i32>} : memref<2x32x128xf32, #tpu.memory_space<vmem>>, vector<1x32x128xf32>,
    }
    %c2_i32_7 = arith.constant 2 : i32
    return
  }
  func.func @transform_0(%arg0: i32) -> (i32, i32, i32) {
    %c0_i32 = arith.constant 0 : i32
    %c0_i32_0 = arith.constant 0 : i32
    %c0_i32_1 = arith.constant 0 : i32
    return %arg0, %c0_i32, %c0_i32_0 : i32, i32, i32
  }
  func.func @transform_1(%arg0: i32) -> (i32, i32, i32) {
    %c0_i32 = arith.constant 0 : i32
    %c0_i32_0 = arith.constant 0 : i32
    %c0_i32_1 = arith.constant 0 : i32
    return %arg0, %c0_i32, %c0_i32_0 : i32, i32, i32
  }
  func.func @transform_2(%arg0: i32) -> (i32, i32) {
    %c0_i32 = arith.constant 0 : i32
    %c0_i32_0 = arith.constant 0 : i32
    %c0_i32_1 = arith.constant 0 : i32
    return %c0_i32, %c0_i32_0 : i32, i32
  }
  func.func @transform_3(%arg0: i32) -> (i32, i32) {
    %c0_i32 = arith.constant 0 : i32
    %c0_i32_0 = arith.constant 0 : i32
    %c0_i32_1 = arith.constant 0 : i32
    return %c0_i32, %c0_i32_0 : i32, i32
  }
  func.func @transform_4(%arg0: i32) -> (i32, i32) {
    %c0_i32 = arith.constant 0 : i32
    %c0_i32_0 = arith.constant 0 : i32
    %c0_i32_1 = arith.constant 0 : i32
    return %c0_i32, %c0_i32_0 : i32, i32
  }
  func.func @transform_5(%arg0: i32) -> (i32, i32) {
    %c0_i32 = arith.constant 0 : i32
    %c0_i32_0 = arith.constant 0 : i32
    %c0_i32_1 = arith.constant 0 : i32
    return %c0_i32, %c0_i32_0 : i32, i32
  }
  func.func @transform_6(%arg0: i32) -> (i32, i32, i32) {
    %c0_i32 = arith.constant 0 : i32
    %c0_i32_0 = arith.constant 0 : i32
    %c0_i32_1 = arith.constant 0 : i32
    return %arg0, %c0_i32, %c0_i32_0 : i32, i32, i32
  }
}

</mosaic_0001>

<bundles_post_ra>
// kernel: rsage_conv2d_forward.1
= control target key start
LH: loop header
LB: loop body
LE: loop exit
PB: predicated region body
PF: predicated region fallthrough
CT: control target
= control target key end

     0   :  { %11 = vsyncpa [#allocation3], 0  ;;  %v24_v0 = vlaneseq  ;;  %s1983_s26 = smov 0   ;;  %s2517_s0 = inlined_call_operand.vmem [shape: f32[2,16,128], index: 0, kind: input, shape index: {}]   ;;  %s2518_s1 = inlined_call_operand.vmem [shape: s32[2,1,1024], index: 1, kind: input, shape index: {}]   ;;  %s2519_s2 = inlined_call_operand.vmem [shape: f32[32,16], index: 2, kind: input, shape index: {}]   ;;  %s2520_s3 = inlined_call_operand.vmem [shape: f32[32,16], index: 3, kind: input, shape index: {}]   ;;  %s2521_s4 = inlined_call_operand.vmem [shape: f32[32,32], index: 4, kind: input, shape index: {}]   ;;  %s2522_s5 = inlined_call_operand.vmem [shape: f32[32,128], index: 5, kind: input, shape index: {}]   ;;  %s2523_s6 = inlined_call_operand.hbm [shape: f32[2,32,128], index: 6, kind: output, shape index: {}]  }
   0x1   :  { %v1859_v1 = vld [vmem:[%s2519_s2] sm:$0xff]  ;;  %v1864_v2 = vld [vmem:[%s2519_s2 + $0x8] sm:$0xff]  ;;  %v1869_v3 = vld [vmem:[%s2519_s2 + $0x10] sm:$0xff] }
   0x2   :  { %2528 = vst [vmem:[#allocation5_spill] sm:$0xff] %v1859_v1  ;;  %2529 = vst [vmem:[#allocation6_spill] sm:$0xff] %v1864_v2  ;;  %v1874_v4 = vld [vmem:[%s2519_s2 + $0x18] sm:$0xff]  ;;  %v1879_v5 = vld [vmem:[%s2520_s3] sm:$0xff]  ;;  %v1881_v6 = vshrl.u32 %v24_v0, 7 }
   0x3   :  { %2530 = vst [vmem:[#allocation7_spill] sm:$0xff] %v1869_v3  ;;  %2531 = vst [vmem:[#allocation8_spill] sm:$0xff] %v1874_v4  ;;  %v1886_v7 = vld [vmem:[%s2520_s3 + $0x8] sm:$0xff]  ;;  %v1891_v8 = vld [vmem:[%s2520_s3 + $0x10] sm:$0xff] }
   0x4   :  { %2532 = vst [vmem:[#allocation9_spill] sm:$0xff] %v1879_v5  ;;  %v1896_v9 = vld [vmem:[%s2520_s3 + $0x18] sm:$0xff]  ;;  %v1901_v10 = vld [vmem:[%s2521_s4] sm:$0xff]  ;;  %v1906_v11 = vld [vmem:[%s2521_s4 + $0x8] sm:$0xff]  ;;  %v1914_v13 = vadd.s32 8, %v1881_v6  ;;  %v1917_v14 = vadd.s32 16, %v1881_v6 }
   0x5   :  { %v1911_v12 = vld [vmem:[%s2521_s4 + $0x10] sm:$0xff]  ;;  %v1920_v15 = vadd.s32 24, %v1881_v6  ;;  %v1923_v16 = vadd.s32 32, %v1881_v6  ;;  %v1928_v17 = vld [vmem:[%s2521_s4 + $0x18] sm:$0xff]  ;;  %v1933_v18 = vld [vmem:[%s2522_s5] sm:$0xff]  ;;  %v1936_v19 = vadd.s32 40, %v1881_v6 }
   0x6   :  { %v1939_v20 = vadd.s32 48, %v1881_v6  ;;  %v1942_v21 = vadd.s32 56, %v1881_v6  ;;  %v1945_v22 = vadd.s32 64, %v1881_v6  ;;  %v1950_v23 = vld [vmem:[%s2522_s5 + $0x8] sm:$0xff]  ;;  %v1955_v24 = vld [vmem:[%s2522_s5 + $0x10] sm:$0xff]  ;;  %v1958_v25 = vadd.s32 72, %v1881_v6 }
   0x7   :  { %v1961_v26 = vadd.s32 80, %v1881_v6  ;;  %v1964_v27 = vadd.s32 88, %v1881_v6  ;;  %v1967_v28 = vadd.s32 96, %v1881_v6  ;;  %v1972_v29 = vld [vmem:[%s2522_s5 + $0x18] sm:$0xff]  ;;  %v1975_v30 = vadd.s32 104, %v1881_v6 }
   0x8   :  { %v1978_v31 = vadd.s32 112, %v1881_v6  ;;  %v1981_v32 = vadd.s32 120, %v1881_v6 }
   0x9 LB: > { %v2535_v2 = vld [vmem:[#allocation6_spill] sm:$0xff]  ;;  %v2536_v1 = vld [vmem:[#allocation5_spill] sm:$0xff]  ;;  %v76_v33 = vsub.s32 1, %v1881_v6  ;;  %v84_v34 = vsub.s32 3, %v1881_v6  ;;  %v72_v35 = vsub.s32 0, %v1881_v6  ;;  %v80_v36 = vsub.s32 2, %v1881_v6  ;;  %s1814_s26 = sphi %s1983_s26, %s62_s26  }
   0xa   : > { %v2533_v4 = vld [vmem:[#allocation8_spill] sm:$0xff]  ;;  %v2534_v3 = vld [vmem:[#allocation7_spill] sm:$0xff]  ;;  %s1451_s5 = sshll.u32 %s1814_s26, 3  ;;  %v1816_v37 = vmov 0.0   ;;  %v1817_v43 = vmov 1.0   ;;  %v92_v44 = vsub.s32 5, %v1881_v6 }
   0xb   : > { %550 = vmatprep.mubr.f32.mxu0 %v1816_v37  ;;  %627 = vmatprep.mubr.f32.mxu1 %v1816_v37  ;;  %s68_s29 = scalar_lea.vmem %s2518_s1, %s1451_s5  ;;  %v100_v45 = vsub.s32 7, %v1881_v6  ;;  %v88_v46 = vsub.s32 4, %v1881_v6  ;;  %s1450_s30 = sshll.u32 %s1814_s26, 4  ;;  %v96_v47 = vsub.s32 6, %v1881_v6  ;;  %v2537_v5 = vld [vmem:[#allocation9_spill] sm:$0xff] }
   0xc   : > { %v1998_v38 = vld [vmem:[%s68_s29] sm:$0xff]  ;;  %s2200_s9 = scalar_lea.vmem %s2517_s0, %s1450_s30  ;;  %s1732_s10 = sshll.u32 %s1814_s26, 5 }
   0xd   : > { %v2001_v39 = vrot.slane %v1998_v38, %v76_v33  ;;  %v2004_v40 = vrot.slane %v1998_v38, %v84_v34  ;;  %v2007_v41 = vrot.slane %v1998_v38, %v72_v35  ;;  %v2010_v42 = vrot.slane %v1998_v38, %v80_v36  ;;  %v2223_v52 = vld [vmem:[%s2200_s9] sm:$0xff]  ;;  %v2254_v53 = vld [vmem:[%s2200_s9 + $0x8] sm:$0xff]  ;;  %s1418_s11 = scalar_lea.vmem [#allocation2], %s1732_s10  ;;  %s62_s26 = sadd.s32 1, %s1814_s26  }
   0xe   : > { %v2180_v48 = vrot.slane %v1998_v38, %v92_v44  ;;  %v2189_v49 = vrot.slane %v1998_v38, %v100_v45  ;;  %v2203_v50 = vrot.slane %v1998_v38, %v88_v46  ;;  %v2212_v51 = vrot.slane %v1998_v38, %v96_v47  ;;  %p59_p0 = scmp.ge.s32.totalorder %s62_s26, 2  }
   0xf   : > { %vm223_vm0 = vcmp.eq.s32.totalorder %v1981_v32, %v2001_v39  ;;  %vm225_vm1 = vcmp.eq.s32.totalorder %v1981_v32, %v2004_v40  ;;  %vm222_vm2 = vcmp.eq.s32.totalorder %v1981_v32, %v2007_v41  ;;  %vm224_vm3 = vcmp.eq.s32.totalorder %v1981_v32, %v2010_v42  ;;  %s1818_s2 = smov (%p59_p0), [#allocation2]  }
  0x10   : > { %1580 = vmatprep.subr.msk.mxu0 %vm223_vm0, %v1817_v43  ;;  %1612 = vmatprep.subr.msk.mxu1 %vm225_vm1, %v1817_v43  ;;  %vm215_vm4 = vcmp.eq.s32.totalorder %v1978_v31, %v2001_v39  ;;  %vm217_vm5 = vcmp.eq.s32.totalorder %v1978_v31, %v2004_v40  ;;  %vm214_vm6 = vcmp.eq.s32.totalorder %v1978_v31, %v2007_v41  ;;  %s1428_s12 = sshll.u32 (%p59_p0), %s1818_s2, 4  ;;  %s1429_s12 = int_to_ptr.vmem [resolvable:$true] %s1428_s12 }
  0x11   : > { %1581 = vmatpush1.msk.msra.mxu0 %vm222_vm2, %v1817_v43  ;;  %1613 = vmatpush1.msk.msra.mxu1 %vm224_vm3, %v1817_v43  ;;  %vm216_vm7 = vcmp.eq.s32.totalorder %v1978_v31, %v2010_v42  ;;  %vm207_vm8 = vcmp.eq.s32.totalorder %v1975_v30, %v2001_v39  ;;  %vm209_vm9 = vcmp.eq.s32.totalorder %v1975_v30, %v2004_v40  ;;  %s1786_s13 = scalar_lea.vmem (%p59_p0), %s1429_s12, 1024  ;;  %p1791_p2 = scmp.lt.s32.totalorder (%p59_p0), %s1429_s12, %s1429_s12 }
  0x12   : > { %1582 = vmatprep.subr.msk.mxu0 %vm215_vm4, %v1817_v43  ;;  %1614 = vmatprep.subr.msk.mxu1 %vm217_vm5, %v1817_v43  ;;  %vm206_vm10 = vcmp.eq.s32.totalorder %v1975_v30, %v2007_v41  ;;  %vm208_vm11 = vcmp.eq.s32.totalorder %v1975_v30, %v2010_v42  ;;  %vm199_vm12 = vcmp.eq.s32.totalorder %v1967_v28, %v2001_v39  ;;  %p1787_p1 = scmp.ne.s32.totalorder (%p59_p0), %s1429_s12, %s1786_s13  ;;  %p1792_p3 = scmp.lt.s32.totalorder (%p59_p0), %s1786_s13, %s1786_s13 }
  0x13   : > { %1583 = vmatpush1.msk.msra.mxu0 %vm214_vm6, %v1817_v43  ;;  %1615 = vmatpush1.msk.msra.mxu1 %vm216_vm7, %v1817_v43  ;;  %vm201_vm13 = vcmp.eq.s32.totalorder %v1967_v28, %v2004_v40  ;;  %vm198_vm14 = vcmp.eq.s32.totalorder %v1967_v28, %v2007_v41  ;;  %vm200_vm15 = vcmp.eq.s32.totalorder %v1967_v28, %v2010_v42 }
  0x14   : > { %1584 = vmatprep.subr.msk.mxu0 %vm207_vm8, %v1817_v43  ;;  %1616 = vmatprep.subr.msk.mxu1 %vm209_vm9, %v1817_v43  ;;  %vm191_vm0 = vcmp.eq.s32.totalorder %v1964_v27, %v2001_v39  ;;  %vm193_vm1 = vcmp.eq.s32.totalorder %v1964_v27, %v2004_v40  ;;  %vm190_vm2 = vcmp.eq.s32.totalorder %v1964_v27, %v2007_v41  ;;  %p1793_p4 = por (%p59_p0), %p1792_p3, %p1791_p2 }
  0x15   : > { %1585 = vmatpush1.msk.msra.mxu0 %vm206_vm10, %v1817_v43  ;;  %1617 = vmatpush1.msk.msra.mxu1 %vm208_vm11, %v1817_v43  ;;  %vm192_vm3 = vcmp.eq.s32.totalorder %v1964_v27, %v2010_v42  ;;  %vm183_vm4 = vcmp.eq.s32.totalorder %v1961_v26, %v2001_v39  ;;  %vm185_vm5 = vcmp.eq.s32.totalorder %v1961_v26, %v2004_v40 }
  0x16   : > { %1586 = vmatprep.subr.msk.mxu0 %vm199_vm12, %v1817_v43  ;;  %1618 = vmatprep.subr.msk.mxu1 %vm201_vm13, %v1817_v43  ;;  %vm182_vm6 = vcmp.eq.s32.totalorder %v1961_v26, %v2007_v41  ;;  %vm184_vm7 = vcmp.eq.s32.totalorder %v1961_v26, %v2010_v42  ;;  %vm175_vm8 = vcmp.eq.s32.totalorder %v1958_v25, %v2001_v39  ;;  %p1794_p5 = pnand (%p59_p0), %p1793_p4, %p1787_p1 }
  0x17   : > { %1587 = vmatpush1.msk.msra.mxu0 %vm198_vm14, %v1817_v43  ;;  %1619 = vmatpush1.msk.msra.mxu1 %vm200_vm15, %v1817_v43  ;;  %vm177_vm9 = vcmp.eq.s32.totalorder %v1958_v25, %v2004_v40  ;;  %vm174_vm10 = vcmp.eq.s32.totalorder %v1958_v25, %v2007_v41  ;;  %vm176_vm11 = vcmp.eq.s32.totalorder %v1958_v25, %v2010_v42 }
  0x18   : > { %1588 = vmatprep.subr.msk.mxu0 %vm191_vm0, %v1817_v43  ;;  %1620 = vmatprep.subr.msk.mxu1 %vm193_vm1, %v1817_v43  ;;  %vm167_vm12 = vcmp.eq.s32.totalorder %v1945_v22, %v2001_v39  ;;  %vm169_vm13 = vcmp.eq.s32.totalorder %v1945_v22, %v2004_v40  ;;  %vm166_vm14 = vcmp.eq.s32.totalorder %v1945_v22, %v2007_v41 }
  0x19   : > { %1589 = vmatpush1.msk.msra.mxu0 %vm190_vm2, %v1817_v43  ;;  %1621 = vmatpush1.msk.msra.mxu1 %vm192_vm3, %v1817_v43  ;;  %vm168_vm15 = vcmp.eq.s32.totalorder %v1945_v22, %v2010_v42  ;;  %vm159_vm0 = vcmp.eq.s32.totalorder %v1942_v21, %v2001_v39  ;;  %vm161_vm1 = vcmp.eq.s32.totalorder %v1942_v21, %v2004_v40 }
  0x1a   : > { %1590 = vmatprep.subr.msk.mxu0 %vm183_vm4, %v1817_v43  ;;  %1622 = vmatprep.subr.msk.mxu1 %vm185_vm5, %v1817_v43  ;;  %vm158_vm2 = vcmp.eq.s32.totalorder %v1942_v21, %v2007_v41  ;;  %vm160_vm3 = vcmp.eq.s32.totalorder %v1942_v21, %v2010_v42  ;;  %vm151_vm4 = vcmp.eq.s32.totalorder %v1939_v20, %v2001_v39 }
  0x1b   : > { %1591 = vmatpush1.msk.msra.mxu0 %vm182_vm6, %v1817_v43  ;;  %1623 = vmatpush1.msk.msra.mxu1 %vm184_vm7, %v1817_v43  ;;  %vm153_vm5 = vcmp.eq.s32.totalorder %v1939_v20, %v2004_v40  ;;  %vm150_vm6 = vcmp.eq.s32.totalorder %v1939_v20, %v2007_v41  ;;  %vm152_vm7 = vcmp.eq.s32.totalorder %v1939_v20, %v2010_v42 }
  0x1c   : > { %1592 = vmatprep.subr.msk.mxu0 %vm175_vm8, %v1817_v43  ;;  %1624 = vmatprep.subr.msk.mxu1 %vm177_vm9, %v1817_v43  ;;  %vm143_vm8 = vcmp.eq.s32.totalorder %v1936_v19, %v2001_v39  ;;  %vm145_vm9 = vcmp.eq.s32.totalorder %v1936_v19, %v2004_v40 }
  0x1d   : > { %1593 = vmatpush1.msk.msra.mxu0 %vm174_vm10, %v1817_v43  ;;  %1625 = vmatpush1.msk.msra.mxu1 %vm176_vm11, %v1817_v43  ;;  %vm142_vm10 = vcmp.eq.s32.totalorder %v1936_v19, %v2007_v41  ;;  %vm144_vm11 = vcmp.eq.s32.totalorder %v1936_v19, %v2010_v42 }
  0x1e   : > { %1594 = vmatprep.subr.msk.mxu0 %vm167_vm12, %v1817_v43  ;;  %1626 = vmatprep.subr.msk.mxu1 %vm169_vm13, %v1817_v43  ;;  %vm135_vm12 = vcmp.eq.s32.totalorder %v1923_v16, %v2001_v39  ;;  %vm137_vm13 = vcmp.eq.s32.totalorder %v1923_v16, %v2004_v40 }
  0x1f   : > { %1595 = vmatpush1.msk.msra.mxu0 %vm166_vm14, %v1817_v43  ;;  %1627 = vmatpush1.msk.msra.mxu1 %vm168_vm15, %v1817_v43  ;;  %vm134_vm14 = vcmp.eq.s32.totalorder %v1923_v16, %v2007_v41  ;;  %vm136_vm15 = vcmp.eq.s32.totalorder %v1923_v16, %v2010_v42 }
  0x20   : > { %1596 = vmatprep.subr.msk.mxu0 %vm159_vm0, %v1817_v43  ;;  %1628 = vmatprep.subr.msk.mxu1 %vm161_vm1, %v1817_v43  ;;  %vm127_vm0 = vcmp.eq.s32.totalorder %v1920_v15, %v2001_v39  ;;  %vm129_vm1 = vcmp.eq.s32.totalorder %v1920_v15, %v2004_v40 }
  0x21   : > { %1597 = vmatpush1.msk.msra.mxu0 %vm158_vm2, %v1817_v43  ;;  %1629 = vmatpush1.msk.msra.mxu1 %vm160_vm3, %v1817_v43  ;;  %vm126_vm2 = vcmp.eq.s32.totalorder %v1920_v15, %v2007_v41  ;;  %vm128_vm3 = vcmp.eq.s32.totalorder %v1920_v15, %v2010_v42 }
  0x22   : > { %1598 = vmatprep.subr.msk.mxu0 %vm151_vm4, %v1817_v43  ;;  %1630 = vmatprep.subr.msk.mxu1 %vm153_vm5, %v1817_v43  ;;  %vm119_vm4 = vcmp.eq.s32.totalorder %v1917_v14, %v2001_v39  ;;  %vm121_vm5 = vcmp.eq.s32.totalorder %v1917_v14, %v2004_v40 }
  0x23   : > { %1599 = vmatpush1.msk.msra.mxu0 %vm150_vm6, %v1817_v43  ;;  %1631 = vmatpush1.msk.msra.mxu1 %vm152_vm7, %v1817_v43  ;;  %vm118_vm6 = vcmp.eq.s32.totalorder %v1917_v14, %v2007_v41  ;;  %vm120_vm7 = vcmp.eq.s32.totalorder %v1917_v14, %v2010_v42 }
  0x24   : > { %1600 = vmatprep.subr.msk.mxu0 %vm143_vm8, %v1817_v43  ;;  %1632 = vmatprep.subr.msk.mxu1 %vm145_vm9, %v1817_v43  ;;  %vm111_vm8 = vcmp.eq.s32.totalorder %v1914_v13, %v2001_v39  ;;  %vm113_vm9 = vcmp.eq.s32.totalorder %v1914_v13, %v2004_v40 }
  0x25   : > { %1601 = vmatpush1.msk.msra.mxu0 %vm142_vm10, %v1817_v43  ;;  %1633 = vmatpush1.msk.msra.mxu1 %vm144_vm11, %v1817_v43  ;;  %vm110_vm10 = vcmp.eq.s32.totalorder %v1914_v13, %v2007_v41  ;;  %vm112_vm11 = vcmp.eq.s32.totalorder %v1914_v13, %v2010_v42 }
  0x26   : > { %1602 = vmatprep.subr.msk.mxu0 %vm135_vm12, %v1817_v43  ;;  %1634 = vmatprep.subr.msk.mxu1 %vm137_vm13, %v1817_v43  ;;  %vm103_vm12 = vcmp.eq.s32.totalorder %v1881_v6, %v2001_v39  ;;  %vm105_vm13 = vcmp.eq.s32.totalorder %v1881_v6, %v2004_v40 }
  0x27   : > { %1603 = vmatpush1.msk.msra.mxu0 %vm134_vm14, %v1817_v43  ;;  %1635 = vmatpush1.msk.msra.mxu1 %vm136_vm15, %v1817_v43  ;;  %vm102_vm14 = vcmp.eq.s32.totalorder %v1881_v6, %v2007_v41  ;;  %vm104_vm15 = vcmp.eq.s32.totalorder %v1881_v6, %v2010_v42 }
  0x28   : > { %1604 = vmatprep.subr.msk.mxu0 %vm127_vm0, %v1817_v43  ;;  %1636 = vmatprep.subr.msk.mxu1 %vm129_vm1, %v1817_v43  ;;  %vm227_vm0 = vcmp.eq.s32.totalorder %v1981_v32, %v2180_v48  ;;  %vm229_vm1 = vcmp.eq.s32.totalorder %v1981_v32, %v2189_v49 }
  0x29   : > { %1605 = vmatpush1.msk.msra.mxu0 %vm126_vm2, %v1817_v43  ;;  %1637 = vmatpush1.msk.msra.mxu1 %vm128_vm3, %v1817_v43  ;;  %vm226_vm2 = vcmp.eq.s32.totalorder %v1981_v32, %v2203_v50  ;;  %vm228_vm3 = vcmp.eq.s32.totalorder %v1981_v32, %v2212_v51 }
  0x2a   : > { %1606 = vmatprep.subr.msk.mxu0 %vm119_vm4, %v1817_v43  ;;  %1638 = vmatprep.subr.msk.mxu1 %vm121_vm5, %v1817_v43  ;;  %vm219_vm4 = vcmp.eq.s32.totalorder %v1978_v31, %v2180_v48  ;;  %vm221_vm5 = vcmp.eq.s32.totalorder %v1978_v31, %v2189_v49 }
  0x2b   : > { %1607 = vmatpush1.msk.msra.mxu0 %vm118_vm6, %v1817_v43  ;;  %1639 = vmatpush1.msk.msra.mxu1 %vm120_vm7, %v1817_v43  ;;  %vm218_vm6 = vcmp.eq.s32.totalorder %v1978_v31, %v2203_v50  ;;  %vm220_vm7 = vcmp.eq.s32.totalorder %v1978_v31, %v2212_v51 }
  0x2c   : > { %1608 = vmatprep.subr.msk.mxu0 %vm111_vm8, %v1817_v43  ;;  %1640 = vmatprep.subr.msk.mxu1 %vm113_vm9, %v1817_v43  ;;  %vm211_vm8 = vcmp.eq.s32.totalorder %v1975_v30, %v2180_v48  ;;  %vm213_vm9 = vcmp.eq.s32.totalorder %v1975_v30, %v2189_v49 }
  0x2d   : > { %1609 = vmatpush1.msk.msra.mxu0 %vm110_vm10, %v1817_v43  ;;  %1641 = vmatpush1.msk.msra.mxu1 %vm112_vm11, %v1817_v43  ;;  %vm210_vm10 = vcmp.eq.s32.totalorder %v1975_v30, %v2203_v50  ;;  %vm212_vm11 = vcmp.eq.s32.totalorder %v1975_v30, %v2212_v51 }
  0x2e   : > { %1610 = vmatprep.subr.msk.mxu0 %vm103_vm12, %v1817_v43  ;;  %1642 = vmatprep.subr.msk.mxu1 %vm105_vm13, %v1817_v43  ;;  %vm203_vm12 = vcmp.eq.s32.totalorder %v1967_v28, %v2180_v48  ;;  %vm205_vm13 = vcmp.eq.s32.totalorder %v1967_v28, %v2189_v49 }
  0x2f   : > { %1611 = vmatpush1.msk.msra.mxu0 %vm102_vm14, %v1817_v43  ;;  %1643 = vmatpush1.msk.msra.mxu1 %vm104_vm15, %v1817_v43  ;;  %vm202_vm14 = vcmp.eq.s32.totalorder %v1967_v28, %v2203_v50  ;;  %vm204_vm15 = vcmp.eq.s32.totalorder %v1967_v28, %v2212_v51 }
  0x30   : > { %551 = vmatmul.mubr.f32.vlgmr.msra.gmra.mxu0 %v2223_v52  ;;  %628 = vmatmul.mubr.f32.vlgmr.msra.gmra.mxu1 %v2223_v52 }
  0x31   : > { %1644 = vmatprep.subr.msk.mxu0 %vm227_vm0, %v1817_v43  ;;  %1676 = vmatprep.subr.msk.mxu1 %vm229_vm1, %v1817_v43  ;;  %vm195_vm0 = vcmp.eq.s32.totalorder %v1964_v27, %v2180_v48  ;;  %vm197_vm1 = vcmp.eq.s32.totalorder %v1964_v27, %v2189_v49 }
  0x32   : > { %1645 = vmatpush1.msk.msra.mxu0 %vm226_vm2, %v1817_v43  ;;  %1677 = vmatpush1.msk.msra.mxu1 %vm228_vm3, %v1817_v43  ;;  %vm194_vm2 = vcmp.eq.s32.totalorder %v1964_v27, %v2203_v50  ;;  %vm196_vm3 = vcmp.eq.s32.totalorder %v1964_v27, %v2212_v51 }
  0x33   : > { %1646 = vmatprep.subr.msk.mxu0 %vm219_vm4, %v1817_v43  ;;  %1678 = vmatprep.subr.msk.mxu1 %vm221_vm5, %v1817_v43  ;;  %vm187_vm4 = vcmp.eq.s32.totalorder %v1961_v26, %v2180_v48  ;;  %vm189_vm5 = vcmp.eq.s32.totalorder %v1961_v26, %v2189_v49 }
  0x34   : > { %556 = vmatprep.mubr.f32.mxu0 %v1816_v37  ;;  %633 = vmatprep.mubr.f32.mxu1 %v1816_v37 }
  0x35   : > { %1647 = vmatpush1.msk.msra.mxu0 %vm218_vm6, %v1817_v43  ;;  %1679 = vmatpush1.msk.msra.mxu1 %vm220_vm7, %v1817_v43  ;;  %vm186_vm6 = vcmp.eq.s32.totalorder %v1961_v26, %v2203_v50  ;;  %vm188_vm7 = vcmp.eq.s32.totalorder %v1961_v26, %v2212_v51 }
  0x36   : > { %557 = vmatmul.mubr.f32.gmra.mxu0 %v2254_v53  ;;  %634 = vmatmul.mubr.f32.gmra.mxu1 %v2254_v53 }
  0x37   : > { %1648 = vmatprep.subr.msk.mxu0 %vm211_vm8, %v1817_v43  ;;  %1680 = vmatprep.subr.msk.mxu1 %vm213_vm9, %v1817_v43  ;;  %vm179_vm8 = vcmp.eq.s32.totalorder %v1958_v25, %v2180_v48  ;;  %vm181_vm9 = vcmp.eq.s32.totalorder %v1958_v25, %v2189_v49 }
  0x38   : > { %1649 = vmatpush1.msk.msra.mxu0 %vm210_vm10, %v1817_v43  ;;  %1681 = vmatpush1.msk.msra.mxu1 %vm212_vm11, %v1817_v43  ;;  %vm178_vm10 = vcmp.eq.s32.totalorder %v1958_v25, %v2203_v50  ;;  %vm180_vm11 = vcmp.eq.s32.totalorder %v1958_v25, %v2212_v51 }
  0x39   : > { %1650 = vmatprep.subr.msk.mxu0 %vm203_vm12, %v1817_v43  ;;  %1682 = vmatprep.subr.msk.mxu1 %vm205_vm13, %v1817_v43  ;;  %vm171_vm12 = vcmp.eq.s32.totalorder %v1945_v22, %v2180_v48  ;;  %vm173_vm13 = vcmp.eq.s32.totalorder %v1945_v22, %v2189_v49 }
  0x3a   : > { %1651 = vmatpush1.msk.msra.mxu0 %vm202_vm14, %v1817_v43  ;;  %1683 = vmatpush1.msk.msra.mxu1 %vm204_vm15, %v1817_v43  ;;  %vm170_vm14 = vcmp.eq.s32.totalorder %v1945_v22, %v2203_v50  ;;  %vm172_vm15 = vcmp.eq.s32.totalorder %v1945_v22, %v2212_v51 }
  0x3b   : > { %1652 = vmatprep.subr.msk.mxu0 %vm195_vm0, %v1817_v43  ;;  %1684 = vmatprep.subr.msk.mxu1 %vm197_vm1, %v1817_v43  ;;  %vm163_vm0 = vcmp.eq.s32.totalorder %v1942_v21, %v2180_v48  ;;  %vm165_vm1 = vcmp.eq.s32.totalorder %v1942_v21, %v2189_v49 }
  0x3c   : > { %1653 = vmatpush1.msk.msra.mxu0 %vm194_vm2, %v1817_v43  ;;  %1685 = vmatpush1.msk.msra.mxu1 %vm196_vm3, %v1817_v43  ;;  %vm162_vm2 = vcmp.eq.s32.totalorder %v1942_v21, %v2203_v50  ;;  %vm164_vm3 = vcmp.eq.s32.totalorder %v1942_v21, %v2212_v51 }
  0x3d   : > { %1654 = vmatprep.subr.msk.mxu0 %vm187_vm4, %v1817_v43  ;;  %1686 = vmatprep.subr.msk.mxu1 %vm189_vm5, %v1817_v43  ;;  %vm155_vm4 = vcmp.eq.s32.totalorder %v1939_v20, %v2180_v48  ;;  %vm157_vm5 = vcmp.eq.s32.totalorder %v1939_v20, %v2189_v49 }
  0x3e   : > { %1655 = vmatpush1.msk.msra.mxu0 %vm186_vm6, %v1817_v43  ;;  %1687 = vmatpush1.msk.msra.mxu1 %vm188_vm7, %v1817_v43  ;;  %vm154_vm6 = vcmp.eq.s32.totalorder %v1939_v20, %v2203_v50  ;;  %vm156_vm7 = vcmp.eq.s32.totalorder %v1939_v20, %v2212_v51 }
  0x3f   : > { %1656 = vmatprep.subr.msk.mxu0 %vm179_vm8, %v1817_v43  ;;  %1688 = vmatprep.subr.msk.mxu1 %vm181_vm9, %v1817_v43  ;;  %vm147_vm8 = vcmp.eq.s32.totalorder %v1936_v19, %v2180_v48  ;;  %vm149_vm9 = vcmp.eq.s32.totalorder %v1936_v19, %v2189_v49 }
  0x40   : > { %1657 = vmatpush1.msk.msra.mxu0 %vm178_vm10, %v1817_v43  ;;  %1689 = vmatpush1.msk.msra.mxu1 %vm180_vm11, %v1817_v43  ;;  %vm146_vm10 = vcmp.eq.s32.totalorder %v1936_v19, %v2203_v50  ;;  %vm148_vm11 = vcmp.eq.s32.totalorder %v1936_v19, %v2212_v51 }
  0x41   : > { %1658 = vmatprep.subr.msk.mxu0 %vm171_vm12, %v1817_v43  ;;  %1690 = vmatprep.subr.msk.mxu1 %vm173_vm13, %v1817_v43  ;;  %vm139_vm12 = vcmp.eq.s32.totalorder %v1923_v16, %v2180_v48  ;;  %vm141_vm13 = vcmp.eq.s32.totalorder %v1923_v16, %v2189_v49 }
  0x42   : > { %1659 = vmatpush1.msk.msra.mxu0 %vm170_vm14, %v1817_v43  ;;  %1691 = vmatpush1.msk.msra.mxu1 %vm172_vm15, %v1817_v43  ;;  %vm138_vm14 = vcmp.eq.s32.totalorder %v1923_v16, %v2203_v50  ;;  %vm140_vm15 = vcmp.eq.s32.totalorder %v1923_v16, %v2212_v51 }
  0x43   : > { %1660 = vmatprep.subr.msk.mxu0 %vm163_vm0, %v1817_v43  ;;  %1692 = vmatprep.subr.msk.mxu1 %vm165_vm1, %v1817_v43  ;;  %vm131_vm0 = vcmp.eq.s32.totalorder %v1920_v15, %v2180_v48  ;;  %vm133_vm1 = vcmp.eq.s32.totalorder %v1920_v15, %v2189_v49 }
  0x44   : > { %1661 = vmatpush1.msk.msra.mxu0 %vm162_vm2, %v1817_v43  ;;  %1693 = vmatpush1.msk.msra.mxu1 %vm164_vm3, %v1817_v43  ;;  %vm130_vm2 = vcmp.eq.s32.totalorder %v1920_v15, %v2203_v50  ;;  %vm132_vm3 = vcmp.eq.s32.totalorder %v1920_v15, %v2212_v51 }
  0x45   : > { %1662 = vmatprep.subr.msk.mxu0 %vm155_vm4, %v1817_v43  ;;  %1694 = vmatprep.subr.msk.mxu1 %vm157_vm5, %v1817_v43  ;;  %vm123_vm4 = vcmp.eq.s32.totalorder %v1917_v14, %v2180_v48  ;;  %vm125_vm5 = vcmp.eq.s32.totalorder %v1917_v14, %v2189_v49 }
  0x46   : > { %1663 = vmatpush1.msk.msra.mxu0 %vm154_vm6, %v1817_v43  ;;  %1695 = vmatpush1.msk.msra.mxu1 %vm156_vm7, %v1817_v43  ;;  %vm122_vm6 = vcmp.eq.s32.totalorder %v1917_v14, %v2203_v50  ;;  %vm124_vm7 = vcmp.eq.s32.totalorder %v1917_v14, %v2212_v51 }
  0x47   : > { %1664 = vmatprep.subr.msk.mxu0 %vm147_vm8, %v1817_v43  ;;  %1696 = vmatprep.subr.msk.mxu1 %vm149_vm9, %v1817_v43  ;;  %vm115_vm8 = vcmp.eq.s32.totalorder %v1914_v13, %v2180_v48  ;;  %vm117_vm9 = vcmp.eq.s32.totalorder %v1914_v13, %v2189_v49 }
  0x48   : > { %1665 = vmatpush1.msk.msra.mxu0 %vm146_vm10, %v1817_v43  ;;  %1697 = vmatpush1.msk.msra.mxu1 %vm148_vm11, %v1817_v43  ;;  %vm114_vm10 = vcmp.eq.s32.totalorder %v1914_v13, %v2203_v50  ;;  %vm116_vm11 = vcmp.eq.s32.totalorder %v1914_v13, %v2212_v51 }
  0x49   : > { %1666 = vmatprep.subr.msk.mxu0 %vm139_vm12, %v1817_v43  ;;  %1698 = vmatprep.subr.msk.mxu1 %vm141_vm13, %v1817_v43  ;;  %vm107_vm12 = vcmp.eq.s32.totalorder %v1881_v6, %v2180_v48  ;;  %vm109_vm13 = vcmp.eq.s32.totalorder %v1881_v6, %v2189_v49 }
  0x4a   : > { %1667 = vmatpush1.msk.msra.mxu0 %vm138_vm14, %v1817_v43  ;;  %1699 = vmatpush1.msk.msra.mxu1 %vm140_vm15, %v1817_v43  ;;  %vm106_vm14 = vcmp.eq.s32.totalorder %v1881_v6, %v2203_v50  ;;  %vm108_vm15 = vcmp.eq.s32.totalorder %v1881_v6, %v2212_v51 }
  0x4b   : > { %1668 = vmatprep.subr.msk.mxu0 %vm131_vm0, %v1817_v43  ;;  %1700 = vmatprep.subr.msk.mxu1 %vm133_vm1, %v1817_v43  ;;  %vm794_vm0 = vcmask 130048   ;;  %vm1195_vm1 = vcmask 261120  }
  0x4c   : > { %1669 = vmatpush1.msk.msra.mxu0 %vm130_vm2, %v1817_v43  ;;  %1701 = vmatpush1.msk.msra.mxu1 %vm132_vm3, %v1817_v43 }
  0x4d   : > { %1670 = vmatprep.subr.msk.mxu0 %vm123_vm4, %v1817_v43  ;;  %1702 = vmatprep.subr.msk.mxu1 %vm125_vm5, %v1817_v43 }
  0x4e   : > { %1671 = vmatpush1.msk.msra.mxu0 %vm122_vm6, %v1817_v43  ;;  %1703 = vmatpush1.msk.msra.mxu1 %vm124_vm7, %v1817_v43 }
  0x4f   : > { %1672 = vmatprep.subr.msk.mxu0 %vm115_vm8, %v1817_v43  ;;  %1704 = vmatprep.subr.msk.mxu1 %vm117_vm9, %v1817_v43 }
  0x50   : > { %1673 = vmatpush1.msk.msra.mxu0 %vm114_vm10, %v1817_v43  ;;  %1705 = vmatpush1.msk.msra.mxu1 %vm116_vm11, %v1817_v43 }
  0x51   : > { %1674 = vmatprep.subr.msk.mxu0 %vm107_vm12, %v1817_v43  ;;  %1706 = vmatprep.subr.msk.mxu1 %vm109_vm13, %v1817_v43 }
  0x52   : > { %1675 = vmatpush1.msk.msra.mxu0 %vm106_vm14, %v1817_v43  ;;  %704 = vmatprep.mubr.f32.mxu0 %v1816_v37 }
  0x53   : > { %1707 = vmatpush1.msk.msra.mxu1 %vm108_vm15, %v1817_v43  ;;  %781 = vmatprep.mubr.f32.mxu1 %v1816_v37 }
  0x54   : > { %705 = vmatmul.mubr.f32.vlgmr.msra.gmra.mxu0 %v2223_v52  ;;  %782 = vmatmul.mubr.f32.vlgmr.msra.gmra.mxu1 %v2223_v52 }
  0x55   : > { %710 = vmatprep.mubr.f32.mxu0 %v1816_v37  ;;  %787 = vmatprep.mubr.f32.mxu1 %v1816_v37 }
  0x58   : > { %711 = vmatmul.mubr.f32.gmra.mxu0 %v2254_v53  ;;  %788 = vmatmul.mubr.f32.gmra.mxu1 %v2254_v53 }
  0x59   : > { %871 = vmatprep.mubr.f32.mxu0 %v1816_v37  ;;  %960 = vmatprep.mubr.f32.mxu1 %v1816_v37 }
  0xf0   : > { %v552_v54 = vpop.f32.mrf.mxu0  ;;  %v629_v55 = vpop.f32.mrf.mxu1 }
  0xf2   : > { %v554_v56 = vpop.f32.mrf.mxu0  ;;  %v631_v57 = vpop.f32.mrf.mxu1 }
  0xf6   : > { %v558_v58 = vpop.f32.mrf.mxu0  ;;  %v635_v59 = vpop.f32.mrf.mxu1 }
  0xf8   : > { %v560_v60 = vpop.f32.mrf.mxu0  ;;  %v637_v61 = vpop.f32.mrf.mxu1 }
  0xf9   : > { %835 = vmatprep.subr.mxu0 %v560_v60  ;;  %924 = vmatprep.subr.mxu1 %v637_v61 }
  0xfa   : > { %836 = vmatpush1.msra.mxu0 %v558_v58  ;;  %925 = vmatpush1.msra.mxu1 %v635_v59 }
  0xfb   : > { %837 = vmatprep.subr.mxu0 %v554_v56  ;;  %926 = vmatprep.subr.mxu1 %v631_v57 }
  0xfc   : > { %838 = vmatpush1.msra.mxu0 %v552_v54  ;;  %927 = vmatpush1.msra.mxu1 %v629_v55 }
  0xfd   : > { %1708 = vmatmul.mubr.msk.f32.vlgmr.msra.gmra.mxu0 %vm794_vm0, %v2536_v1  ;;  %1712 = vmatmul.mubr.msk.f32.vlgmr.msra.gmra.mxu1 %vm794_vm0, %v2536_v1 }
  0xfe   : > { %877 = vmatprep.mubr.f32.mxu0 %v1816_v37  ;;  %966 = vmatprep.mubr.f32.mxu1 %v1816_v37 }
 0x101   : > { %1709 = vmatmul.mubr.msk.f32.gmra.mxu0 %vm794_vm0, %v2535_v2  ;;  %1713 = vmatmul.mubr.msk.f32.gmra.mxu1 %vm794_vm0, %v2535_v2 }
 0x102   : > { %883 = vmatprep.mubr.f32.mxu0 %v1816_v37  ;;  %972 = vmatprep.mubr.f32.mxu1 %v1816_v37 }
 0x105   : > { %1710 = vmatmul.mubr.msk.f32.gmra.mxu0 %vm794_vm0, %v2534_v3  ;;  %1714 = vmatmul.mubr.msk.f32.gmra.mxu1 %vm794_vm0, %v2534_v3 }
 0x106   : > { %889 = vmatprep.mubr.f32.mxu0 %v1816_v37  ;;  %978 = vmatprep.mubr.f32.mxu1 %v1816_v37 }
 0x109   : > { %1711 = vmatmul.mubr.msk.f32.gmra.mxu0 %vm794_vm0, %v2533_v4  ;;  %1715 = vmatmul.mubr.msk.f32.gmra.mxu1 %vm794_vm0, %v2533_v4 }
 0x10a   : > { %1049 = vmatprep.mubr.f32.mxu0 %v1816_v37  ;;  %1138 = vmatprep.mubr.f32.mxu1 %v1816_v37 }
 0x114   : > { %v706_v62 = vpop.f32.mrf.mxu0  ;;  %v783_v63 = vpop.f32.mrf.mxu1 }
 0x116   : > { %v708_v0 = vpop.f32.mrf.mxu0  ;;  %v785_v33 = vpop.f32.mrf.mxu1 }
 0x118   : > { %v712_v34 = vpop.f32.mrf.mxu0  ;;  %v789_v35 = vpop.f32.mrf.mxu1 }
 0x11a   : > { %v714_v36 = vpop.f32.mrf.mxu0  ;;  %v791_v38 = vpop.f32.mrf.mxu1 }
 0x11b   : > { %1013 = vmatprep.subr.mxu0 %v714_v36  ;;  %1102 = vmatprep.subr.mxu1 %v791_v38 }
 0x11c   : > { %1014 = vmatpush1.msra.mxu0 %v712_v34  ;;  %1103 = vmatpush1.msra.mxu1 %v789_v35 }
 0x11d   : > { %1015 = vmatprep.subr.mxu0 %v708_v0  ;;  %1104 = vmatprep.subr.mxu1 %v785_v33 }
 0x11e   : > { %1016 = vmatpush1.msra.mxu0 %v706_v62  ;;  %1105 = vmatpush1.msra.mxu1 %v783_v63 }
 0x11f   : > { %1716 = vmatmul.mubr.msk.f32.vlgmr.msra.gmra.mxu0 %vm794_vm0, %v2536_v1  ;;  %1720 = vmatmul.mubr.msk.f32.vlgmr.msra.gmra.mxu1 %vm794_vm0, %v2536_v1 }
 0x120   : > { %1055 = vmatprep.mubr.f32.mxu0 %v1816_v37  ;;  %1144 = vmatprep.mubr.f32.mxu1 %v1816_v37 }
 0x121   : > { %1761 = vmatprep.subr.mxu1 %v2254_v53 }
 0x122   : > { %1762 = vmatpush3.msra.mxu1 %v2254_v53 }
 0x123   : > { %1717 = vmatmul.mubr.msk.f32.gmra.mxu0 %vm794_vm0, %v2535_v2  ;;  %1721 = vmatmul.mubr.msk.f32.gmra.mxu1 %vm794_vm0, %v2535_v2 }
 0x124   : > { %1061 = vmatprep.mubr.f32.mxu0 %v1816_v37  ;;  %1150 = vmatprep.mubr.f32.mxu1 %v1816_v37 }
 0x125   : > { %1763 = vmatprep.subr.mxu1 %v2223_v52 }
 0x126   : > { %1764 = vmatpush3.msra.mxu1 %v2223_v52 }
 0x127   : > { %1718 = vmatmul.mubr.msk.f32.gmra.mxu0 %vm794_vm0, %v2534_v3  ;;  %1722 = vmatmul.mubr.msk.f32.gmra.mxu1 %vm794_vm0, %v2534_v3 }
 0x128   : > { %1067 = vmatprep.mubr.f32.mxu0 %v1816_v37  ;;  %1156 = vmatprep.mubr.f32.mxu1 %v1816_v37 }
 0x12b   : > { %1719 = vmatmul.mubr.msk.f32.gmra.mxu0 %vm794_vm0, %v2533_v4  ;;  %1723 = vmatmul.mubr.msk.f32.gmra.mxu1 %vm794_vm0, %v2533_v4 }
 0x12c   : > { %1765 = vmatprep.mubr.msk.f32.mxu1 %vm794_vm0, %v2537_v5  ;;  %1755 = vmatprep.mubr.msk.f32.mxu0 %vm1195_vm1, %v1901_v10 }
 0x12f   : > { %1766 = vmatmul.mubr.msk.f32.vlgmr.msra.gmra.mxu1 %vm794_vm0, %v1886_v7 }
 0x130   : > { %1768 = vmatprep.mubr.msk.f32.mxu1 %vm794_vm0, %v1891_v8 }
 0x133   : > { %1769 = vmatmul.mubr.msk.f32.gmra.mxu1 %vm794_vm0, %v1896_v9 }
 0x1bd   : > { %v962_v37 = vpop.f32.mrf.mxu1  ;;  %v873_v39 = vpop.f32.mrf.mxu0 }
 0x1bf   : > { %v964_v40 = vpop.f32.mrf.mxu1  ;;  %v875_v41 = vpop.f32.mrf.mxu0 }
 0x1c0   : > { %v1163_v58 = vmax.f32 %v873_v39, %v875_v41 }
 0x1c1   : > { %v968_v42 = vpop.f32.mrf.mxu1  ;;  %v879_v43 = vpop.f32.mrf.mxu0 }
 0x1c2   : > { %v1167_v34 = vmax.f32 %v1163_v58, %v962_v37 }
 0x1c3   : > { %v970_v44 = vpop.f32.mrf.mxu1  ;;  %v881_v45 = vpop.f32.mrf.mxu0 }
 0x1c4   : > { %v1164_v54 = vmax.f32 %v879_v43, %v881_v45  ;;  %v1171_v43 = vmax.f32 %v1167_v34, %v964_v40 }
 0x1c5   : > { %v974_v46 = vpop.f32.mrf.mxu1  ;;  %v885_v47 = vpop.f32.mrf.mxu0 }
 0x1c6   : > { %v1168_v61 = vmax.f32 %v1164_v54, %v968_v42 }
 0x1c7   : > { %v976_v48 = vpop.f32.mrf.mxu1  ;;  %v887_v49 = vpop.f32.mrf.mxu0 }
 0x1c8   : > { %v1165_v55 = vmax.f32 %v885_v47, %v887_v49  ;;  %v1172_v38 = vmax.f32 %v1168_v61, %v970_v44 }
 0x1c9   : > { %v980_v50 = vpop.f32.mrf.mxu1  ;;  %v891_v51 = vpop.f32.mrf.mxu0 }
 0x1ca   : > { %v1169_v62 = vmax.f32 %v1165_v55, %v974_v46 }
 0x1cb   : > { %v982_v52 = vpop.f32.mrf.mxu1  ;;  %v893_v53 = vpop.f32.mrf.mxu0 }
 0x1cc   : > { %v1166_v63 = vmax.f32 %v891_v51, %v893_v53  ;;  %v1173_v1 = vmax.f32 %v1169_v62, %v976_v48 }
 0x1ce   : > { %v1170_v2 = vmax.f32 %v1166_v63, %v980_v50 }
 0x1d0   : > { %v1174_v5 = vmax.f32 %v1170_v2, %v982_v52 }
 0x1df   : > { %v1051_v56 = vpop.f32.mrf.mxu0  ;;  %v1140_v57 = vpop.f32.mrf.mxu1 }
 0x1e0   : > { %v1175_v41 = vmax.f32 %v1171_v43, %v1051_v56 }
 0x1e1   : > { %v1053_v59 = vpop.f32.mrf.mxu0  ;;  %v1142_v60 = vpop.f32.mrf.mxu1 }
 0x1e2   : > { %v1179_v55 = vmax.f32 %v1175_v41, %v1053_v59 }
 0x1e3   : > { %v1057_v0 = vpop.f32.mrf.mxu0  ;;  %v1146_v33 = vpop.f32.mrf.mxu1 }
 0x1e4   : > { %v1176_v45 = vmax.f32 %v1172_v38, %v1057_v0  ;;  %v1183_v62 = vmax.f32 %v1179_v55, %v1140_v57 }
 0x1e5   : > { %v1059_v35 = vpop.f32.mrf.mxu0  ;;  %v1148_v36 = vpop.f32.mrf.mxu1 }
 0x1e6   : > { %v1180_v51 = vmax.f32 %v1176_v45, %v1059_v35  ;;  %v1187_v0 = vmax.f32 %v1183_v62, %v1142_v60 }
 0x1e7   : > { %v1063_v3 = vpop.f32.mrf.mxu0  ;;  %v1152_v4 = vpop.f32.mrf.mxu1 }
 0x1e8   : > { %v1177_v47 = vmax.f32 %v1173_v1, %v1063_v3  ;;  %v1184_v48 = vmax.f32 %v1180_v51, %v1146_v33 }
 0x1e9   : > { %v1065_v49 = vpop.f32.mrf.mxu0  ;;  %v1154_v39 = vpop.f32.mrf.mxu1 }
 0x1ea   : > { %v1181_v42 = vmax.f32 %v1177_v47, %v1065_v49  ;;  %v1188_v1 = vmax.f32 %v1184_v48, %v1148_v36 }
 0x1eb   : > { %v1069_v46 = vpop.f32.mrf.mxu0  ;;  %v1158_v37 = vpop.f32.mrf.mxu1 }
 0x1ec   : > { %v1178_v53 = vmax.f32 %v1174_v5, %v1069_v46  ;;  %v1185_v58 = vmax.f32 %v1181_v42, %v1152_v4  ;;  %v1192_v2 = vmax.f32 %v1188_v1, 0.0  ;;  %v1191_v5 = vmax.f32 %v1187_v0, 0.0 }
 0x1ed   : > { %v1071_v54 = vpop.f32.mrf.mxu0  ;;  %v1160_v61 = vpop.f32.mrf.mxu1 }
 0x1ee   : > { %v1182_v44 = vmax.f32 %v1178_v53, %v1071_v54  ;;  %v1189_v40 = vmax.f32 %v1185_v58, %v1154_v39 }
 0x1ef   : > { %v1767_v4 = vpop.f32.mrf.mxu1 }
 0x1f0   : > { %v1186_v50 = vmax.f32 %v1182_v44, %v1158_v37  ;;  %v1193_v56 = vmax.f32 %v1189_v40, 0.0 }
 0x1f1   : > { %v1371_v52 = vpop.f32.mrf.mxu1 }
 0x1f2   : > { %v1190_v63 = vmax.f32 %v1186_v50, %v1160_v61 }
 0x1f3   : > { %v1770_v33 = vpop.f32.mrf.mxu1 }
 0x1f4   : > { %v1194_v3 = vmax.f32 %v1190_v63, 0.0 }
 0x1f5   : > { %v1381_v47 = vpop.f32.mrf.mxu1 }
 0x1f6   : > { %1747 = vmatprep.subr.mxu0 %v1194_v3 }
 0x1f7   : > { %1748 = vmatpush3.msra.mxu0 %v1194_v3 }
 0x1f8   : > { %1749 = vmatprep.subr.mxu0 %v1193_v56 }
 0x1f9   : > { %1750 = vmatpush3.msra.mxu0 %v1193_v56 }
 0x1fa   : > { %1751 = vmatprep.subr.mxu0 %v1192_v2 }
 0x1fb   : > { %1752 = vmatpush3.msra.mxu0 %v1192_v2 }
 0x1fc   : > { %1753 = vmatprep.subr.mxu0 %v1191_v5 }
 0x1fd   : > { %1754 = vmatpush3.msra.mxu0 %v1191_v5 }
 0x1fe   : > { %1756 = vmatmul.mubr.msk.f32.vlgmr.msra.gmra.mxu0 %vm1195_vm1, %v1906_v11 }
 0x1ff   : > { %1758 = vmatprep.mubr.msk.f32.mxu0 %vm1195_vm1, %v1911_v12 }
 0x202   : > { %1759 = vmatmul.mubr.msk.f32.gmra.mxu0 %vm1195_vm1, %v1928_v17 }
 0x2be   : > { %v1757_v57 = vpop.f32.mrf.mxu0 }
 0x2bf   : > { %v1377_v59 = vadd.f32 %v1767_v4, %v1757_v57 }
 0x2c0   : > { %v1274_v60 = vpop.f32.mrf.mxu0 }
 0x2c1   : > { %v1391_v34 = vmax.f32 %v1377_v59, 0.0  ;;  %v1372_v35 = vadd.f32 %v1371_v52, %v1274_v60 }
 0x2c2   : > { %v1760_v36 = vpop.f32.mrf.mxu0 }
 0x2c3   : > { %v1390_v38 = vmax.f32 %v1372_v35, 0.0  ;;  %v1387_v43 = vadd.f32 %v1770_v33, %v1760_v36  ;;  %v1395_v49 = vadd.f32 %v1391_v34, %v1950_v23 }
 0x2c4   : > { %v1284_v45 = vpop.f32.mrf.mxu0 }
 0x2c5   : > { %v1394_v39 = vadd.f32 %v1390_v38, %v1933_v18  ;;  %v1393_v41 = vmax.f32 %v1387_v43, 0.0  ;;  %v1382_v42 = vadd.f32 %v1381_v47, %v1284_v45  ;;  %v1399_v53 = vmul.f32 %v1395_v49, %v1395_v49 }
 0x2c7   : > { %v1398_v46 = vmul.f32 %v1394_v39, %v1394_v39  ;;  %v1392_v51 = vmax.f32 %v1382_v42, 0.0  ;;  %v1397_v54 = vadd.f32 %v1393_v41, %v1972_v29 }
 0x2c9   : > { %v1396_v37 = vadd.f32 %v1392_v51, %v1955_v24  ;;  %v1402_v55 = vadd.f32 %v1399_v53, %v1398_v46  ;;  %v1401_v44 = vmul.f32 %v1397_v54, %v1397_v54 }
 0x2cb   : > { %v1400_v58 = vmul.f32 %v1396_v37, %v1396_v37 }
 0x2cd   : > { %v1403_v48 = vadd.f32 %v1402_v55, %v1400_v58 }
 0x2cf   : > { %v1404_v50 = vadd.f32 %v1403_v48, %v1401_v44 }
 0x2d1   : > { %v1405_v61 = vrot.slane %v1404_v50, 4 }
 0x2d3   : > { %v1406_v62 = vadd.f32 %v1405_v61, %v1404_v50 }
 0x2d5   : > { %v1407_v40 = vrot.slane %v1406_v62, 2 }
 0x2d7   : > { %v1408_v63 = vadd.f32 %v1407_v40, %v1406_v62 }
 0x2d9   : > { %v1409_v1 = vrot.slane %v1408_v63, 1 }
 0x2db   : > { %v1410_v3 = vadd.f32 %v1409_v1, %v1408_v63 }
 0x2dd   : > { %v1411_v0 = vmax.f32 %v1410_v3, 1e-24 }
 0x2df   : > { %1784 = vrsqrt.f32 %v1411_v0 }
 0x2ec   : > { %v1785_v56 = vpop.eup %1784  ;;  %61 = sbr.rel (!%p59_p0) target bundleno = 9 (0x9), region = 54 }
 0x2ed   : > { %v1413_v2 = vmul.f32 %v1785_v56, %v1394_v39  ;;  %v1414_v5 = vmul.f32 %v1785_v56, %v1395_v49  ;;  %v1415_v4 = vmul.f32 %v1785_v56, %v1396_v37  ;;  %v1416_v52 = vmul.f32 %v1785_v56, %v1397_v54 }
 0x2ef   : > { %1419 = vst [vmem:[%s1418_s11] sm:$0xff] %v1413_v2  ;;  %1420 = vst [vmem:[%s1418_s11 + $0x8] sm:$0xff] %v1414_v5 }
 0x2f0   : > { %1421 = vst [vmem:[%s1418_s11 + $0x10] sm:$0xff] %v1415_v4  ;;  %1422 = vst [vmem:[%s1418_s11 + $0x18] sm:$0xff] %v1416_v52 }
 0x2f1   :  { %1797 = shalt.err (!%p1794_p5)
}
 0x2f2   :  { %s1819_s14 = smov 128   ;;  %s1820_s15 = smov 8  }
 0x2f3   :  { %1434 = dma.vmem_to_hbm [thread:$0]  %s1429_s12, 1024, %s2523_s6, [#allocation3], %s1819_s14, %s1819_s14, %s1820_s15  }
 0x2f4   :  { %1810 = dma.done.wait [#allocation3], 1024  }
 0x2f5   :  { %1811 = vsyncadd [#allocation3], 4294966272 }
 0x2f6   :  { %1438 = vsyncpa [#allocation3], 1 }

</bundles_post_ra>
